<compile_context>
chip_gen: v7x
topology: tpu7x:2x2x1
jax: 0.10.0
libtpu: 0.0.40
codegen_flags: <defaults>
</compile_context>

<pallas_src>
import jax
import jax.numpy as jnp
from jax.experimental import pallas as pl
from jax.experimental.pallas import tpu as pltpu


def _ped_pos_encoder_kernel(x_ref, w_ref, b_ref, o_ref):
    # x_ref: (tb, d_in)      -- one batch tile
    # w_ref: (d_in, d_out)   -- pre-transposed, resident in VMEM
    # b_ref: (1, d_out)      -- resident in VMEM
    # o_ref: (tb, d_out)     -- unpadded output tile
    acc = jnp.dot(x_ref[...], w_ref[...],
                  preferred_element_type=jnp.float32)       # MXU, f32 accumulate
    acc = acc + b_ref[...].astype(jnp.float32)              # bias add (VPU)
    o_ref[...] = jnp.maximum(acc, 0.0).astype(o_ref.dtype)  # ReLU (VPU)


def prepare_params(weight, bias):
    """One-time prep: transpose PyTorch-layout weight to (d_in, d_out).

    weight: (feature_dim, 3*P) PyTorch (out, in) layout; bias: (feature_dim,).
    Returns (w_t: (d_in, d_out), b_row: (1, d_out)).
    """
    w_t = jnp.asarray(weight).T           # (d_in, d_out), canonical MXU RHS
    b_row = jnp.asarray(bias)[None, :]    # (1, d_out)
    return w_t, b_row


def ped_pos_encoder(x, w_t, b_row, *, block_b=2048):
    """x: (B, 3*P) f32; w_t/b_row from prepare_params(). Returns (B, feature_dim)."""
    B, d_in = x.shape
    d_out = w_t.shape[1]

    # Batch tile: whole batch if small (block == full dim, always legal);
    # otherwise block_b rows (multiple of 8).  Ragged last block is handled by
    # Pallas boundary masking - no host-side padding / copies.
    tb = B if B <= block_b else block_b
    grid = (pl.cdiv(B, tb),)

    return pl.pallas_call(
        _ped_pos_encoder_kernel,
        out_shape=jax.ShapeDtypeStruct((B, d_out), x.dtype),
        grid=grid,
        in_specs=[
            pl.BlockSpec((tb, d_in), lambda i: (i, 0)),     # x: tiled over batch
            pl.BlockSpec((d_in, d_out), lambda i: (0, 0)),  # weight: resident
            pl.BlockSpec((1, d_out), lambda i: (0, 0)),     # bias: resident
        ],
        out_specs=pl.BlockSpec((tb, d_out), lambda i: (i, 0)),
        compiler_params=pltpu.CompilerParams(
            dimension_semantics=("parallel",),  # independent batch tiles (v7x: 2 TCs)
        ),
    )(x, w_t, b_row)


if __name__ == "__main__":
    # Module hyperparameters (synthetic, deterministic):
    fixed_num_pedestrians = 8          # -> in_features = 24
    feature_dim = 32
    batch = 2
    in_features = 3 * fixed_num_pedestrians

    key = jax.random.PRNGKey(0)
    kx, kw, kb = jax.random.split(key, 3)

    # Deterministic parameter init (matches nn.Linear shapes: weight (out, in), bias (out,))
    bound = 1.0 / (in_features ** 0.5)
    weight = jax.random.uniform(kw, (feature_dim, in_features),
                                minval=-bound, maxval=bound, dtype=jnp.float32)
    bias = jax.random.uniform(kb, (feature_dim,),
                              minval=-bound, maxval=bound, dtype=jnp.float32)

    x = jax.random.normal(kx, (batch, in_features), dtype=jnp.float32)

    # One-time parameter prep (transpose), then the kernel call.
    w_t, b_row = prepare_params(weight, bias)
    out = ped_pos_encoder(x, w_t, b_row)
    out = jax.block_until_ready(out)

    # Reference check (plain JAX, PyTorch semantics: relu(x @ W.T + b)).
    ref = jnp.maximum(x @ weight.T + bias, 0.0)
    assert out.shape == (batch, feature_dim)
    assert jnp.allclose(out, ref, atol=1e-5, rtol=1e-5)

    print("KERNEL_OK")
</pallas_src>

<mosaic_0001>
module attributes {stable_mosaic.version = 11 : i64} {
  func.func @_ped_pos_encoder_kernel(%arg0: i32, %arg1: memref<2x24xf32, #tpu.memory_space<vmem>>, %arg2: memref<24x32xf32, #tpu.memory_space<vmem>>, %arg3: memref<1x32xf32, #tpu.memory_space<vmem>>, %arg4: memref<2x32xf32, #tpu.memory_space<vmem>>) attributes {dimension_semantics = [#tpu.dimension_semantics<parallel>], iteration_bounds = array<i64: 1>, scalar_prefetch = 0 : i64, scratch_operands = 0 : i64, tpu.core_type = #tpu.core_type<tc>, window_params = [{transform_indices = @transform_0, window_bounds = array<i64: 2, 24>}, {pipeline_mode = #tpu.pipeline_mode<synchronous>, transform_indices = @transform_1, window_bounds = array<i64: 24, 32>}, {pipeline_mode = #tpu.pipeline_mode<synchronous>, transform_indices = @transform_2, window_bounds = array<i64: 1, 32>}, {transform_indices = @transform_3, window_bounds = array<i64: 2, 32>}]} {
    %c0 = arith.constant 0 : index
    %c0_0 = arith.constant 0 : index
    %0 = vector.load %arg1[%c0, %c0_0] : memref<2x24xf32, #tpu.memory_space<vmem>>, vector<2x24xf32>
    %c0_1 = arith.constant 0 : index
    %c0_2 = arith.constant 0 : index
    %1 = vector.load %arg2[%c0_1, %c0_2] : memref<24x32xf32, #tpu.memory_space<vmem>>, vector<24x32xf32>
    %cst = arith.constant dense<0.000000e+00> : vector<2x32xf32>
    %2 = tpu.matmul %0, %1, %cst {dimension_numbers = #tpu.dot_dimension_numbers<[1], [0], [0], [1], [0, 0, 1, 1], [], []>} : vector<2x24xf32>, vector<24x32xf32>, vector<2x32xf32> -> vector<2x32xf32>
    %c0_3 = arith.constant 0 : index
    %c0_4 = arith.constant 0 : index
    %3 = vector.load %arg3[%c0_3, %c0_4] : memref<1x32xf32, #tpu.memory_space<vmem>>, vector<1x32xf32>
    %4 = vector.broadcast %3 : vector<1x32xf32> to vector<2x32xf32>
    %5 = arith.addf %2, %4 : vector<2x32xf32>
    %cst_5 = arith.constant 0.000000e+00 : f32
    %6 = vector.broadcast %cst_5 : f32 to vector<2x32xf32>
    %7 = arith.maximumf %5, %6 : vector<2x32xf32>
    %c0_6 = arith.constant 0 : index
    %c0_7 = arith.constant 0 : index
    %8 = vector.load %arg4[%c0_6, %c0_7] : memref<2x32xf32, #tpu.memory_space<vmem>>, vector<2x32xf32>
    tpu.vector_store %arg4[%c0_6, %c0_7], %7 {strides = array<i32>} : memref<2x32xf32, #tpu.memory_space<vmem>>, vector<2x32xf32>,
    return
  }
  func.func @transform_0(%arg0: i32) -> (i32, i32) {
    %c0_i32 = arith.constant 0 : i32
    %c0_i32_0 = arith.constant 0 : i32
    return %arg0, %c0_i32 : i32, i32
  }
  func.func @transform_1(%arg0: i32) -> (i32, i32) {
    %c0_i32 = arith.constant 0 : i32
    %c0_i32_0 = arith.constant 0 : i32
    %c0_i32_1 = arith.constant 0 : i32
    return %c0_i32, %c0_i32_0 : i32, i32
  }
  func.func @transform_2(%arg0: i32) -> (i32, i32) {
    %c0_i32 = arith.constant 0 : i32
    %c0_i32_0 = arith.constant 0 : i32
    %c0_i32_1 = arith.constant 0 : i32
    return %c0_i32, %c0_i32_0 : i32, i32
  }
  func.func @transform_3(%arg0: i32) -> (i32, i32) {
    %c0_i32 = arith.constant 0 : i32
    %c0_i32_0 = arith.constant 0 : i32
    return %arg0, %c0_i32 : i32, i32
  }
}

</mosaic_0001>

<bundles_post_ra>
// kernel: tpu_custom_call.1
= control target key start
LH: loop header
LB: loop body
LE: loop exit
PB: predicated region body
PF: predicated region fallthrough
CT: control target
= control target key end

     0   :  { %8 = vsyncpa [#allocation3], 0  ;;  %s317_s0 = inlined_call_operand.hbm [shape: f32[2,24], index: 0, kind: input, shape index: {}]   ;;  %s318_s1 = inlined_call_operand.hbm [shape: f32[24,32], index: 1, kind: input, shape index: {}]   ;;  %s319_s2 = inlined_call_operand.vmem [shape: f32[1,32], index: 2, kind: input, shape index: {}]   ;;  %s320_s3 = inlined_call_operand.hbm [shape: f32[2,32], index: 3, kind: output, shape index: {}]  }
   0x1   :  { %9 = vsyncpa [#allocation6], 0 }
   0x2   :  { %10 = vsyncpa [#allocation4], 0  ;;  %s243_s12 = smov [#allocation2]   ;;  %s244_s14 = smov [#allocation5]  }
   0x3   :  { %s17_s13 = sshll.u32 %s243_s12, 4  ;;  %s26_s15 = sshll.u32 %s244_s14, 4  ;;  %s18_s13 = int_to_ptr.vmem [resolvable:$true] %s17_s13  ;;  %s271_s15 = int_to_ptr.vmem [resolvable:$true] %s26_s15 }
   0x4   :  { %s171_s18 = scalar_lea.hbm %s317_s0, 32 }
   0x5   :  { %p172_p0 = scmp.ne.s32.totalorder %s317_s0, %s171_s18  ;;  %p175_p1 = scmp.lt.u32.totalorder %s171_s18, %s317_s0 }
   0x7   :  { %p177_p2 = pnand %p175_p1, %p172_p0 }
   0x9   :  { %180 = shalt.err (!%p177_p2)
}
   0xa   :  { %s181_s23 = scalar_lea.vmem %s18_s13, 32  ;;  %p186_p4 = scmp.lt.s32.totalorder %s18_s13, %s18_s13 }
   0xb   :  { %p182_p3 = scmp.ne.s32.totalorder %s18_s13, %s181_s23  ;;  %p187_p5 = scmp.lt.s32.totalorder %s181_s23, %s181_s23 }
   0xd   :  { %p188_p6 = por %p187_p5, %p186_p4 }
   0xf   :  { %p189_p7 = pnand %p188_p6, %p182_p3 }
  0x11   :  { %192 = shalt.err (!%p189_p7)
}
  0x12   :  { %20 = dma.hbm_to_vmem [thread:$0]  %s317_s0, 32, %s18_s13, [#allocation3]  }
  0x13   :  { %s193_s28 = scalar_lea.hbm %s318_s1, 384 }
  0x14   :  { %p194_p8 = scmp.ne.s32.totalorder %s318_s1, %s193_s28  ;;  %p197_p9 = scmp.lt.u32.totalorder %s193_s28, %s318_s1 }
  0x16   :  { %p199_p10 = pnand %p197_p9, %p194_p8 }
  0x18   :  { %202 = shalt.err (!%p199_p10)
}
  0x19   :  { %s203_s6 = scalar_lea.vmem %s271_s15, 384  ;;  %p208_p12 = scmp.lt.s32.totalorder %s271_s15, %s271_s15 }
  0x1a   :  { %p204_p11 = scmp.ne.s32.totalorder %s271_s15, %s203_s6  ;;  %p209_p13 = scmp.lt.s32.totalorder %s203_s6, %s203_s6 }
  0x1c   :  { %p210_p0 = por %p209_p13, %p208_p12 }
  0x1e   :  { %p211_p1 = pnand %p210_p0, %p204_p11 }
  0x20   :  { %214 = shalt.err (!%p211_p1)
}
  0x21   :  { %s245_s0 = smov 128   ;;  %s246_s7 = smov 8  }
  0x22   :  { %32 = dma.hbm_to_vmem [thread:$0]  %s318_s1, 384, %s271_s15, [#allocation6], %s245_s0, %s245_s0, %s246_s7  }
  0x23   :  { %237 = dma.done.wait [#allocation3], 32  }
  0x24   :  { %238 = vsyncadd [#allocation3], 4294967264 }
  0x25   :  { %239 = dma.done.wait [#allocation6], 384  }
  0x26   :  { %240 = vsyncadd [#allocation6], 4294966912  ;;  %v247_v0 = vmov 0.0|0.0   ;;  %vm248_vm0 = vmmov 0   ;;  %v249_v1 = vmov 0.0   ;;  %v42_v2 = vld [vmem:[#allocation5] sm:$0xff] }
  0x27   :  { %160 = vmatprep.subr.bf16.mxu0 %v247_v0  ;;  %157 = vmatprep.mubr.msk.f32.mxu0 %vm248_vm0, %v249_v1  ;;  %v43_v3 = vld [vmem:[#allocation5 + $0x8] sm:$0xff]  ;;  %v44_v5 = vld [vmem:[#allocation5 + $0x10] sm:$0xff]  ;;  %v41_v6 = vld [vmem:[#allocation2] sm:$0x3]  ;;  %vm52_vm1 = vcmask 195584   ;;  %s250_s11 = smov [#allocation7]  }
  0x28   :  { %v161_v4 = vpack.c.bf16 %v43_v3, %v42_v2  ;;  %v145_v7 = vld [vmem:[%s319_s2] ss:$0 sm:$0xff]  ;;  %s135_s12 = sshll.u32 %s250_s11, 4  ;;  %vm127_vm2 = vcmask 254976   ;;  %s136_s12 = int_to_ptr.vmem [resolvable:$true] %s135_s12 }
  0x29   :  { %s215_s13 = scalar_lea.vmem %s136_s12, 32  ;;  %p220_p3 = scmp.lt.s32.totalorder %s136_s12, %s136_s12 }
  0x2a   :  { %162 = vmatpush3.bf16.msra.mxu0 %v161_v4  ;;  %p216_p2 = scmp.ne.s32.totalorder %s136_s12, %s215_s13  ;;  %p221_p4 = scmp.lt.s32.totalorder %s215_s13, %s215_s13 }
  0x2b   :  { %155 = vmatprep.subr.mxu0 %v249_v1 }
  0x2c   :  { %p222_p5 = por %p221_p4, %p220_p3 }
  0x2e   :  { %156 = vmatpush3.msra.mxu0 %v44_v5  ;;  %p223_p6 = pnand %p222_p5, %p216_p2 }
  0x2f   :  { %158 = vmatmul.mubr.msk.f32.vlgmr.msra.gmra.mrb[0].mxu0 %vm52_vm1, %v41_v6 }
 0x102   :  { %v122_v8 = vpop.f32.mrb[0].mxu0 }
 0x103   :  { %v123_v9 = vadd.f32 %v145_v7, %v122_v8  ;;  %v159_v10 = vpop.f32.mrb[1].mxu0 }
 0x105   :  { %v126_v11 = vmax.f32 %v123_v9, 0.0 }
 0x107   :  { %128 = vst.msk [vmem:[#allocation7] sm:$0x3] %vm127_vm2, %v126_v11 }
 0x108   :  { %226 = shalt.err (!%p223_p6)
}
 0x109   :  { %s227_s2 = scalar_lea.hbm %s320_s3, 32 }
 0x10a   :  { %p228_p7 = scmp.ne.s32.totalorder %s320_s3, %s227_s2  ;;  %p231_p8 = scmp.lt.u32.totalorder %s227_s2, %s320_s3 }
 0x10c   :  { %p233_p9 = pnand %p231_p8, %p228_p7 }
 0x10e   :  { %236 = shalt.err (!%p233_p9)
}
 0x10f   :  { %138 = dma.vmem_to_hbm [thread:$0]  %s136_s12, 32, %s320_s3, [#allocation4]  }
 0x110   :  { %241 = dma.done.wait [#allocation4], 32  }
 0x111   :  { %242 = vsyncadd [#allocation4], 4294967264 }
 0x112   :  { %142 = vsyncpa [#allocation3], 1 }
 0x113   :  { %143 = vsyncpa [#allocation6], 1 }
 0x114   :  { %144 = vsyncpa [#allocation4], 1 }

</bundles_post_ra>
